<compile_context>
chip_gen: v7x
topology: tpu7x:2x2x1
jax: 0.10.0
libtpu: 0.0.40
codegen_flags: <defaults>
</compile_context>

<pallas_src>
import functools

import jax
import jax.numpy as jnp
from jax.experimental import pallas as pl
from jax.experimental.pallas import tpu as pltpu


# ---------------------------------------------------------------------------
# kernels
# ---------------------------------------------------------------------------

def _implicit_a_kernel_chw(imp_ref, x_ref, o_ref, *, tc):
    # imp_ref: (Cpad, 1) full per-channel bias, resident in VMEM for the whole
    #          grid (untiled spec); sliced per channel-tile below.
    # x_ref:   (tc, thw) input tile in its native dtype.
    # o_ref:   (tc, thw) output tile in the promoted dtype.
    c = pl.program_id(1)
    bias = imp_ref[pl.ds(c * tc, tc), :]                       # (tc, 1)
    # In-kernel promotion (free VPU op) + lane-broadcast add: vld -> vadd -> vst.
    o_ref[...] = x_ref[...].astype(o_ref.dtype) + bias


def _implicit_a_kernel_flat(bias_ref, x_ref, o_ref):
    # Lane-dense fallback for tiny feature maps (HW < 128).
    # bias_ref: (1, tl) precomputed per-element bias slab tile.
    # x_ref / o_ref: (N, tl).
    o_ref[...] = x_ref[...].astype(o_ref.dtype) + bias_ref[...]


# ---------------------------------------------------------------------------
# helpers
# ---------------------------------------------------------------------------

def _round_up(a: int, b: int) -> int:
    return -(-a // b) * b


def _sublane_multiple(*dtypes) -> int:
    # Second-minor block dim must be a multiple of the dtype tiling
    # (8 for 32-bit, 16 for bf16, 32 for int8/fp8) or the full extent.
    m = 8
    for dt in dtypes:
        bits = jnp.dtype(dt).itemsize * 8
        m = max(m, max(8, 256 // bits))
    return m


_TARGET_BLOCK_BYTES = 2 * 1024 * 1024   # ~2 MiB per x/out block
_CAP_BLOCK_BYTES = 4 * 1024 * 1024      # hard cap (v7x VMEM headroom)
_VMEM_LIMIT = 32 * 1024 * 1024          # generation-safe scoped VMEM budget


# ---------------------------------------------------------------------------
# wrapper
# ---------------------------------------------------------------------------

def implicit_a(x_nchw: jax.Array, implicit_nc11: jax.Array, *,
               donate_x: bool = False) -> jax.Array:
    """ImplicitA forward: implicit (1,C,1,1) + x (N,C,H,W)."""
    N, C, H, W = x_nchw.shape
    HW = H * W

    out_dtype = jnp.promote_types(x_nchw.dtype, implicit_nc11.dtype)
    bpe_x = jnp.dtype(x_nchw.dtype).itemsize
    bpe_out = jnp.dtype(out_dtype).itemsize
    bpe = max(bpe_x, bpe_out)

    # Aliasing only valid when no dtype promotion happens (shapes/dtypes match).
    can_alias = bool(donate_x) and (jnp.dtype(x_nchw.dtype) == jnp.dtype(out_dtype))

    cost = pl.CostEstimate(
        flops=N * C * HW,
        transcendentals=0,
        bytes_accessed=N * C * HW * (bpe_x + bpe_out) + C * bpe_out,
    )

    # ---------------- lane-dense fallback for tiny feature maps ------------
    if HW < 128:
        L = C * HW
        x2 = x_nchw.reshape(N, L)                       # native dtype, no copy
        bias_slab = jnp.broadcast_to(
            implicit_nc11.reshape(C, 1).astype(out_dtype), (C, HW)
        ).reshape(1, L)                                 # built once, tiny

        if N * L * bpe <= _CAP_BLOCK_BYTES:
            tl = L                                      # full-extent lanes
        else:
            tl = (_TARGET_BLOCK_BYTES // (N * bpe)) // 128 * 128
            tl = int(max(128, min(tl, L)))
        l_tiles = pl.cdiv(L, tl)
        if l_tiles == 1 and L >= 256:
            # Give v7x's second TensorCore something to do.
            tl = _round_up(pl.cdiv(L, 2), 128)
            l_tiles = pl.cdiv(L, tl)

        out2 = pl.pallas_call(
            _implicit_a_kernel_flat,
            out_shape=jax.ShapeDtypeStruct((N, L), out_dtype),
            grid_spec=pltpu.PrefetchScalarGridSpec(
                num_scalar_prefetch=0,
                grid=(l_tiles,),
                in_specs=[
                    pl.BlockSpec((1, tl), lambda s: (0, s)),
                    pl.BlockSpec((N, tl), lambda s: (0, s)),
                ],
                out_specs=pl.BlockSpec((N, tl), lambda s: (0, s)),
            ),
            compiler_params=pltpu.CompilerParams(
                dimension_semantics=("parallel",),
                vmem_limit_bytes=_VMEM_LIMIT,
            ),
            cost_estimate=cost,
            input_output_aliases=({1: 0} if can_alias else {}),
        )(bias_slab, x2)
        return out2.reshape(N, C, H, W)

    # ---------------- main path: (N, C, HW) channel x spatial tiling --------
    x3 = x_nchw.reshape(N, C, HW)                       # native dtype, no copy
    sub = _sublane_multiple(x_nchw.dtype, out_dtype)

    tc_min = C if C <= sub else sub
    if tc_min * HW * bpe <= _CAP_BLOCK_BYTES:
        # Prefer full-HW lanes: each block row set is a contiguous HBM region.
        thw = HW
        if C * HW * bpe <= _TARGET_BLOCK_BYTES:
            tc = C
        else:
            tc8 = (_TARGET_BLOCK_BYTES // (HW * bpe)) // sub * sub
            tc = int(min(max(tc8, sub), C))
    else:
        # Spatial extent alone is huge: keep a thin channel tile, split lanes.
        tc = tc_min
        thw = (_TARGET_BLOCK_BYTES // (tc * bpe)) // 128 * 128
        thw = int(max(128, min(thw, HW)))

    c_tiles = pl.cdiv(C, tc)
    hw_tiles = pl.cdiv(HW, thw)

    # Megacore guard: never leave the whole op as a single program at batch 1.
    if N * c_tiles * hw_tiles == 1:
        if HW >= 256:
            thw = _round_up(pl.cdiv(HW, 2), 128)
            hw_tiles = pl.cdiv(HW, thw)
        elif C >= 2 * sub:
            tc = _round_up(pl.cdiv(C, 2), sub)
            c_tiles = pl.cdiv(C, tc)

    # Bias: whole (zero-padded) array resident in VMEM, sliced per channel tile.
    c_pad = c_tiles * tc
    imp = implicit_nc11.reshape(C, 1).astype(out_dtype)
    if c_pad != C:
        imp = jnp.pad(imp, ((0, c_pad - C), (0, 0)))

    kernel = functools.partial(_implicit_a_kernel_chw, tc=tc)

    out3 = pl.pallas_call(
        kernel,
        out_shape=jax.ShapeDtypeStruct((N, C, HW), out_dtype),
        grid_spec=pltpu.PrefetchScalarGridSpec(
            num_scalar_prefetch=0,
            grid=(N, c_tiles, hw_tiles),
            in_specs=[
                # Whole bias, untiled, resident in VMEM for the entire grid.
                pl.BlockSpec(memory_space=pltpu.MemorySpace.VMEM),
                # One (tc, thw) tile of one batch element per grid step.
                pl.BlockSpec((pl.Squeezed(), tc, thw), lambda n, c, s: (n, c, s)),
            ],
            out_specs=pl.BlockSpec((pl.Squeezed(), tc, thw),
                                   lambda n, c, s: (n, c, s)),
        ),
        compiler_params=pltpu.CompilerParams(
            # No reduction axis: all parallel -> v7x megacore can split tiles
            # across both TensorCores even when N == 1 (guarded above).
            dimension_semantics=("parallel", "parallel", "parallel"),
            vmem_limit_bytes=_VMEM_LIMIT,
        ),
        cost_estimate=cost,
        # Deeper pipelining (pl.Buffered(3)) intentionally not enabled by
        # default: second-order vs tile growth and costs VMEM on v7x.
        input_output_aliases=({1: 0} if can_alias else {}),
    )(imp, x3)

    return out3.reshape(N, C, H, W)


def init_implicit_a_params(key, channel, mean=0.0, std=0.02, dtype=jnp.float32):
    """Deterministic stand-in for nn.init.normal_(torch.zeros(1, C, 1, 1))."""
    return mean + std * jax.random.normal(key, (1, channel, 1, 1), dtype=dtype)


if __name__ == "__main__":
    key = jax.random.PRNGKey(0)
    k_p1, k_x1, k_p2, k_x2, k_p3, k_x3, k_x4 = jax.random.split(key, 7)

    # ---- test 1: small module-consistent shapes (main path) ----------------
    N, C, H, W = 2, 4, 16, 16
    x = jax.random.normal(k_x1, (N, C, H, W), dtype=jnp.float32)
    implicit = init_implicit_a_params(k_p1, C, mean=0.0, std=0.02)
    out = jax.block_until_ready(implicit_a(x, implicit))
    ref = implicit + x
    assert out.shape == (N, C, H, W)
    assert out.dtype == ref.dtype
    assert jnp.allclose(out, ref, atol=1e-6), "mismatch vs reference (small)"

    # ---- test 2: exercises full-HW lanes, megacore split, partial tiles -----
    N2, C2, H2, W2 = 1, 96, 40, 40
    x2 = jax.random.normal(k_x2, (N2, C2, H2, W2), dtype=jnp.float32)
    implicit2 = init_implicit_a_params(k_p2, C2, mean=0.0, std=0.02)
    out2 = jax.block_until_ready(implicit_a(x2, implicit2))
    ref2 = implicit2 + x2
    assert out2.shape == (N2, C2, H2, W2)
    assert jnp.allclose(out2, ref2, atol=1e-6), "mismatch vs reference (tiled)"

    # ---- test 3: tiny feature map -> lane-dense fallback path ---------------
    N3, C3, H3, W3 = 1, 32, 8, 8          # HW = 64 < 128
    x3 = jax.random.normal(k_x3, (N3, C3, H3, W3), dtype=jnp.float32)
    implicit3 = init_implicit_a_params(k_p3, C3, mean=0.0, std=0.02)
    out3 = jax.block_until_ready(implicit_a(x3, implicit3))
    ref3 = implicit3 + x3
    assert out3.shape == (N3, C3, H3, W3)
    assert jnp.allclose(out3, ref3, atol=1e-6), "mismatch vs reference (flat)"

    # ---- test 4: bf16 input + f32 param -> in-kernel dtype promotion --------
    x4 = jax.random.normal(k_x4, (N, C, H, W), dtype=jnp.bfloat16)
    out4 = jax.block_until_ready(implicit_a(x4, implicit))
    ref4 = implicit + x4                  # promotes to f32, like PyTorch
    assert out4.dtype == ref4.dtype
    assert jnp.allclose(out4, ref4, atol=1e-2), "mismatch vs reference (bf16)"

    print("KERNEL_OK")
</pallas_src>

<mosaic_0001>
module attributes {stable_mosaic.version = 11 : i64} {
  func.func @_implicit_a_kernel_chw(%arg0: i32, %arg1: i32, %arg2: i32, %arg3: memref<4x1xf32, #tpu.memory_space<vmem>>, %arg4: memref<1x4x256xf32, #tpu.memory_space<vmem>>, %arg5: memref<1x4x256xf32, #tpu.memory_space<vmem>>) attributes {dimension_semantics = [#tpu.dimension_semantics<parallel>, #tpu.dimension_semantics<parallel>, #tpu.dimension_semantics<parallel>], iteration_bounds = array<i64: 2, 1, 1>, scalar_prefetch = 0 : i64, scratch_operands = 0 : i64, tpu.core_type = #tpu.core_type<tc>, window_params = [{pipeline_mode = #tpu.pipeline_mode<synchronous>, transform_indices = @transform_0, window_bounds = array<i64: 4, 1>}, {transform_indices = @transform_1, window_bounds = array<i64: 1, 4, 256>}, {transform_indices = @transform_2, window_bounds = array<i64: 1, 4, 256>}]} {
    %c4_i32 = arith.constant 4 : i32
    %0 = arith.muli %arg1, %c4_i32 : i32
    %1 = arith.index_cast %0 : i32 to index
    %c0 = arith.constant 0 : index
    %2 = vector.load %arg3[%1, %c0] : memref<4x1xf32, #tpu.memory_space<vmem>>, vector<4x1xf32>
    %c0_0 = arith.constant 0 : index
    %c0_1 = arith.constant 0 : index
    %c0_2 = arith.constant 0 : index
    %3 = vector.load %arg4[%c0_0, %c0_1, %c0_2] : memref<1x4x256xf32, #tpu.memory_space<vmem>>, vector<1x4x256xf32>
    %4 = vector.shape_cast %3 : vector<1x4x256xf32> to vector<4x256xf32>
    %5 = vector.broadcast %2 : vector<4x1xf32> to vector<4x256xf32>
    %6 = arith.addf %4, %5 : vector<4x256xf32>
    %c0_3 = arith.constant 0 : index
    %c0_4 = arith.constant 0 : index
    %c0_5 = arith.constant 0 : index
    %7 = vector.load %arg5[%c0_3, %c0_4, %c0_5] : memref<1x4x256xf32, #tpu.memory_space<vmem>>, vector<1x4x256xf32>
    %8 = vector.shape_cast %7 : vector<1x4x256xf32> to vector<4x256xf32>
    %9 = vector.shape_cast %6 : vector<4x256xf32> to vector<1x4x256xf32>
    tpu.vector_store %arg5[%c0_3, %c0_4, %c0_5], %9 {strides = array<i32>} : memref<1x4x256xf32, #tpu.memory_space<vmem>>, vector<1x4x256xf32>,
    return
  }
  func.func @transform_0(%arg0: i32, %arg1: i32, %arg2: i32) -> (i32, i32) {
    %c0_i32 = arith.constant 0 : i32
    %c0_i32_0 = arith.constant 0 : i32
    %c0_i32_1 = arith.constant 0 : i32
    return %c0_i32, %c0_i32_0 : i32, i32
  }
  func.func @transform_1(%arg0: i32, %arg1: i32, %arg2: i32) -> (i32, i32, i32) {
    %c0_i32 = arith.constant 0 : i32
    return %arg0, %arg1, %arg2 : i32, i32, i32
  }
  func.func @transform_2(%arg0: i32, %arg1: i32, %arg2: i32) -> (i32, i32, i32) {
    %c0_i32 = arith.constant 0 : i32
    return %arg0, %arg1, %arg2 : i32, i32, i32
  }
}

</mosaic_0001>

<bundles_post_ra>
// kernel: tpu_custom_call.1
= control target key start
LH: loop header
LB: loop body
LE: loop exit
PB: predicated region body
PF: predicated region fallthrough
CT: control target
= control target key end

     0   :  { %7 = vsyncpa [#allocation3], 0  ;;  %s713_s0 = inlined_call_operand.vmem [shape: f32[4,1], index: 0, kind: input, shape index: {}]   ;;  %s714_s1 = inlined_call_operand.hbm [shape: f32[2,4,256], index: 1, kind: input, shape index: {}]   ;;  %s715_s2 = inlined_call_operand.hbm [shape: f32[2,4,256], index: 2, kind: output, shape index: {}]  }
   0x1   :  { %9 = vsyncpa [#allocation3 + $0x1], 0 }
   0x2   :  { %10 = vsyncpa [#allocation4], 0 }
   0x3   :  { %12 = vsyncpa [#allocation4 + $0x1], 0  ;;  %s538_s9 = smov 0   ;;  %s540_s10 = smov 0  }
   0x4   :  { %s542_s11 = smov 0   ;;  %s544_s12 = smov 0  }
   0x5   :  { %s546_s13 = smov 0   ;;  %s548_s14 = smov 0  }
   0x6 LB: > { %s323_s15 = sadd.s32 4294967295, %s517_s14   ;;  %s324_s16 = sadd.s32 4294967294, %s517_s14   ;;  %s517_s14 = sphi %s548_s14, %s18_s14   ;;  %s513_s13 = sphi %s546_s13, %s731_s13   ;;  %s509_s12 = sphi %s544_s12, %s730_s12   ;;  %s505_s11 = sphi %s542_s11, %s729_s11   ;;  %s501_s10 = sphi %s540_s10, %s728_s10   ;;  %s497_s9 = sphi %s538_s9, %s727_s9  }
   0x7   : > { %s37_s17 = sadd.s32 1, %s513_s13  ;;  %s69_s18 = sadd.s32 1, %s505_s11 }
   0x8   : > { %p39_p0 = scmp.ge.s32.totalorder %s37_s17, 2  ;;  %p76_p1 = scmp.ne.s32.totalorder %s505_s11, %s501_s10 }
   0x9   : > { %p77_p2 = scmp.eq.s32.totalorder %s517_s14, 0  ;;  %p82_p3 = scmp.ne.s32.totalorder %s501_s10, %s497_s9 }
   0xa   : > { %s733_s17 = smov (%p39_p0, %s37_s17), 0  ;;  %p83_p5 = scmp.eq.s32.totalorder %s323_s15, 0 }
   0xb   : > { %p579_p4 = por %p77_p2, %p76_p1  ;;  %s62_s20 = ssub.s32 %s513_s13, %s733_s17 }
   0xc   : > { %p110_p6 = scmp.eq.s32.totalorder %s323_s15, 1  ;;  %p67_p7 = scmp.eq.s32.totalorder %s62_s20, 0 }
   0xd   : > { %p585_p8 = por %p83_p5, %p82_p3  ;;  %p116_p10 = scmp.eq.s32.totalorder %s324_s16, 1 }
   0xe   : > { %p589_p9 = por %p110_p6, %p76_p1  ;;  %p352_p13 = scmp.lt.s32.totalorder %s517_s14, 2 }
   0xf   : > { %s594_s23 = scalar_select %p67_p7, %s505_s11, %s69_s18  }
  0x10   : > { %s719_s22 = scalar_select %p589_p9, 1, 0 }
  0x11   : > { %p596_p11 = por %p116_p10, %p82_p3  ;;  %s139_s25 = sand.u32 1, %s505_s11  }
  0x12   : > { %s327_s26 = sshll.u32 %s139_s25, 3  ;;  %s338_s27 = sshll.u32 %s513_s13, 7 }
  0x13   : > { %s720_s24 = scalar_select %p596_p11, 1, 0 }
  0x14   : > { %s607_s30 = scalar_lea.hbm %s714_s1, %s338_s27  ;;  %s143_s3 = scalar_lea.vmem [#allocation2], %s327_s26 }
  0x15   : > { %s155_s4 = sshll.u32 %s143_s3, 4  ;;  %p613_p0 = pnand %p352_p13, %p579_p4  ;;  %s609_s4 = int_to_ptr.vmem [resolvable:$true] %s155_s4 }
  0x16   : > { %s140_s6 = scalar_lea.sflag [#allocation3], %s139_s25  ;;  %s405_s7 = scalar_lea.hbm %s607_s30, 128 }
  0x17   : > { %p406_p3 = scmp.ne.s32.totalorder %s607_s30, %s405_s7  ;;  %p407_p5 = pneg %p613_p0 }
  0x18   : > { %s410_s16 = scalar_lea.hbm %s714_s1, 256  ;;  %p411_p4 = scmp.lt.u32.totalorder %s607_s30, %s714_s1 }
  0x19   : > { %p408_p6 = pnand %p407_p5, %p406_p3  ;;  %p412_p10 = scmp.lt.u32.totalorder %s410_s16, %s405_s7 }
  0x1a   : > { %p414_p12 = scmp.lt.u32.totalorder %s405_s7, %s607_s30 }
  0x1b   : > { %p409_p7 = pneg %p408_p6  ;;  %p413_p13 = por %p412_p10, %p411_p4 }
  0x1d   : > { %p415_p1 = por %p414_p12, %p413_p13 }
  0x1f   : > { %p416_p2 = pnand %p415_p1, %p409_p7 }
  0x21   : > { %419 = shalt.err (!%p416_p2)
}
  0x22   : > { %s420_s20 = scalar_lea.vmem %s609_s4, 128  ;;  %s519_s25 = smov [#allocation2]  }
  0x23   : > { %p421_p3 = scmp.ne.s32.totalorder %s609_s4, %s420_s20  ;;  %s425_s26 = sshll.u32 %s519_s25, 4  ;;  %s426_s26 = int_to_ptr.vmem [resolvable:$false] %s425_s26 }
  0x24   : > { %s427_s27 = scalar_lea.vmem %s426_s26, 256  ;;  %p428_p9 = scmp.lt.s32.totalorder %s609_s4, %s426_s26 }
  0x25   : > { %p423_p6 = pnand %p421_p3, %p407_p5  ;;  %p429_p4 = scmp.lt.s32.totalorder %s427_s27, %s420_s20 }
  0x27   : > { %p424_p11 = pneg %p423_p6  ;;  %p430_p10 = por %p429_p4, %p428_p9 }
  0x29   : > { %p431_p12 = pnand %p430_p10, %p424_p11 }
  0x2b   : > { %434 = shalt.err (!%p431_p12)
}
  0x2c   : > { %347 = dma.hbm_to_vmem [thread:$0]  (!%p613_p0), %s607_s30, 128, %s609_s4, %s140_s6  }
  0x2d   : > { %p722_p1 = scmp.lt.s32.totalorder %s517_s14, 3  ;;  %p723_p2 = scmp.ge.s32.totalorder %s517_s14, 1 }
  0x2f   : > { %p161_p5 = pnand %p723_p2, %p722_p1 }
  0x30   : > { %s649_s28 = sand.u32 (!%p161_p5), 1, %s501_s10  }
  0x31   : > { %164 = sbr.rel (%p161_p5) target bundleno = 205 (0xcd), region = 28  ;;  %s331_s29 = sshll.u32 (!%p161_p5), %s649_s28, 3 }
  0x32   : > { %s167_s3 = scalar_lea.sflag (!%p161_p5), [#allocation3], %s649_s28  ;;  %s170_s7 = scalar_lea.vmem (!%p161_p5), [#allocation2], %s331_s29 }
  0x38   : > { %488 = dma.done.wait (%p585_p8), %s167_s3, 128  }
  0x39   : > { %490 = vsyncadd (%p585_p8), %s167_s3, 4294967168  ;;  %v520_v0 = vmov 0   ;;  %v195_v1 = vld [vmem:[%s713_s0] sm:$0xf]  ;;  %v521_v2 = vmov 839922192   ;;  %v204_v4 = vlaneseq }
  0x3a   : > { %404 = vset.pattern.permute.xlu0 %v520_v0  ;;  %v202_v3 = vunpack.c.l.s4 %v521_v2  ;;  %v196_v8 = vld [vmem:[%s170_s7] sm:$0xff]  ;;  %s339_s21 = sshll.u32 %s509_s12, 7  ;;  %s190_s5 = scalar_lea.vmem [#allocation5], %s331_s29 }
  0x3b   : > { %199 = vperm.xlu0 %404, %v195_v1   ;;  %v205_v6 = vshrl.u32 %v204_v4, 7  ;;  %s230_s6 = sshll.u32 %s190_s5, 4  ;;  %s664_s16 = scalar_lea.hbm %s715_s2, %s339_s21  ;;  %s666_s6 = int_to_ptr.vmem [resolvable:$true] %s230_s6 }
  0x3c   : > { %v203_v5 = vunpack.c.0.s8 %v202_v3  ;;  %s212_s18 = scalar_lea.sflag [#allocation4], %s649_s28  ;;  %s435_s19 = scalar_lea.vmem %s666_s6, 128 }
  0x3d   : > { %p436_p8 = scmp.ne.s32.totalorder %s666_s6, %s435_s19  ;;  %p724_p9 = scmp.ne.s32.totalorder %s719_s22, 0 }
  0x3e   : > { %v206_v7 = vsub.s32 %v203_v5, %v205_v6  ;;  %s522_s12 = smov [#allocation5]  }
  0x3f   : > { %p437_p11 = pnand %p436_p8, %p724_p9  ;;  %s439_s20 = sshll.u32 %s522_s12, 4  ;;  %s440_s20 = int_to_ptr.vmem [resolvable:$false] %s439_s20 }
  0x40   : > { %s441_s25 = scalar_lea.vmem %s440_s20, 256  ;;  %p442_p7 = scmp.lt.s32.totalorder %s666_s6, %s440_s20 }
  0x41   : > { %p438_p0 = pneg %p437_p11  ;;  %p443_p13 = scmp.lt.s32.totalorder %s441_s25, %s435_s19 }
  0x43   : > { %p444_p3 = por %p443_p13, %p442_p7 }
  0x45   : > { %p445_p6 = pnand %p444_p3, %p438_p0 }
  0xba   : > { %v200_v9 = vpop.permute.xlu0 %199 }
  0xbb   : > { %v207_v10 = vrot.slane %v200_v9, %v206_v7 }
  0xbd   : > { %v209_v11 = vadd.f32 %v207_v10, %v196_v8 }
  0xbf   : > { %210 = vst [vmem:[%s190_s5] sm:$0xff] %v209_v11 }
  0xc0   : > { %448 = shalt.err (!%p445_p6)
}
  0xc1   : > { %s449_s26 = scalar_lea.hbm %s664_s16, 128  ;;  %s453_s29 = scalar_lea.hbm %s715_s2, 256 }
  0xc2   : > { %p450_p4 = scmp.ne.s32.totalorder %s664_s16, %s449_s26  ;;  %p454_p1 = scmp.lt.u32.totalorder %s664_s16, %s715_s2 }
  0xc3   : > { %p455_p2 = scmp.lt.u32.totalorder %s453_s29, %s449_s26  ;;  %p457_p8 = scmp.lt.u32.totalorder %s449_s26, %s664_s16 }
  0xc4   : > { %p451_p10 = pnand %p450_p4, %p724_p9 }
  0xc5   : > { %p456_p5 = por %p455_p2, %p454_p1 }
  0xc6   : > { %p452_p12 = pneg %p451_p10 }
  0xc7   : > { %p458_p11 = por %p457_p8, %p456_p5 }
  0xc9   : > { %p459_p0 = pnand %p458_p11, %p452_p12 }
  0xcb   : > { %462 = shalt.err (!%p459_p0)
}
  0xcc   : > { %342 = dma.vmem_to_hbm [thread:$0]  (%p724_p9), %s666_s6, 128, %s664_s16, %s212_s18  }
  0xcd PF: > { %s242_s30 = sand.u32 1, %s497_s9   ;;  %p725_p7 = scmp.ne.s32.totalorder %s720_s24, 0 }
  0xce   : > { %p726_p13 = scmp.ge.s32.totalorder %s517_s14, 2  ;;  %s243_s4 = scalar_lea.sflag [#allocation4], %s242_s30 }
  0xd0   : > { %p349_p3 = pnand %p726_p13, %p725_p7 }
  0xd2   : > { %492 = dma.done.wait (!%p349_p3), %s243_s4, 128  }
  0xd3   : > { %494 = vsyncadd (!%p349_p3), %s243_s4, 4294967168  ;;  %s18_s14 = sadd.s32 1, %s517_s14   ;;  %s727_s9 = smov %s501_s10 }
  0xd4   : > { %p15_p6 = scmp.ge.s32.totalorder %s18_s14, 4   ;;  %s728_s10 = smov %s505_s11 }
  0xd5   : > { %s729_s11 = smov %s594_s23  ;;  %s730_s12 = smov %s513_s13 }
  0xd6   : > { %s731_s13 = smov %s733_s17  ;;  %17 = sbr.rel (!%p15_p6) target bundleno = 6 (0x6), region = 74 }
  0xdd   :  { %248 = vsyncpa [#allocation3], 1 }
  0xde   :  { %250 = vsyncpa [#allocation3 + $0x1], 1 }
  0xdf   :  { %251 = vsyncpa [#allocation4], 1 }
  0xe0   :  { %253 = vsyncpa [#allocation4 + $0x1], 1 }

</bundles_post_ra>
